<compile_context>
chip_gen: v7x
topology: tpu7x:2x2x1
jax: 0.10.0
libtpu: 0.0.40
codegen_flags: <defaults>
</compile_context>

<pallas_src>
import numpy as np

import jax
import jax.numpy as jnp
from jax import lax
from jax.experimental import pallas as pl
from jax.experimental.pallas import tpu as pltpu


# -----------------------------------------------------------------------------
# In-kernel helpers (trace-time static loops; operate on jnp values)
# -----------------------------------------------------------------------------
def _shift_slab(x2d, n_batch, lseg, offset, out_len):
    """Per-batch shifted window with zero fill; batch folded into the lane axis.

    x2d: (C, n_batch*lseg).  Returns (C, n_batch*out_len) where, per batch segment,
    out[:, m] = x[:, m + offset] if 0 <= m + offset < lseg else 0.
    """
    c = x2d.shape[0]
    if offset == 0 and out_len == lseg:
        return x2d
    parts = []
    for nb in range(n_batch):
        xb = x2d[:, nb * lseg:(nb + 1) * lseg]
        lo, hi = offset, offset + out_len
        left = min(max(0, -lo), out_len)
        right = min(max(0, hi - lseg), out_len - left)
        core_lo = min(max(lo, 0), lseg)
        core_hi = max(core_lo, min(hi, lseg))
        segs = []
        if left:
            segs.append(jnp.zeros((c, left), x2d.dtype))
        if core_hi > core_lo:
            segs.append(xb[:, core_lo:core_hi])
        if right:
            segs.append(jnp.zeros((c, right), x2d.dtype))
        parts.append(segs[0] if len(segs) == 1 else jnp.concatenate(segs, axis=1))
    return parts[0] if n_batch == 1 else jnp.concatenate(parts, axis=1)


def _im2col(x2d, n_batch, lin, k_size, pad):
    """im2col for stride-1 Conv1d; rows ordered (tap k major, cin minor)."""
    lout = lin + 2 * pad - k_size + 1
    rows = [_shift_slab(x2d, n_batch, lin, k - pad, lout) for k in range(k_size)]
    return (rows[0] if k_size == 1 else jnp.concatenate(rows, axis=0)), lout


def _batchnorm_1pass(z, gamma, beta, eps=1e-5):
    """Training-mode BatchNorm1d over the (N*L) lane axis, one-pass statistics."""
    inv_n = 1.0 / z.shape[1]
    mean = jnp.sum(z, axis=1, keepdims=True) * inv_n
    mean_sq = jnp.sum(z * z, axis=1, keepdims=True) * inv_n
    var = mean_sq - mean * mean
    return (z - mean) * lax.rsqrt(var + eps) * gamma + beta


# -----------------------------------------------------------------------------
# Fused decoder kernel (ResBlocks + ConvTranspose upsampling), built from static metadata
# -----------------------------------------------------------------------------
def _build_decoder_kernel(meta):
    act = meta['act']
    if act == 'relu':
        act_fn = lambda z: jnp.maximum(z, 0.0)
    elif act == 'tanh':
        act_fn = jnp.tanh
    elif act == 'leakyrelu':
        act_fn = lambda z: jnp.where(z >= 0.0, z, 0.01 * z)
    else:
        # TODO(synk): 'prelu' / 'gelu' activations not wired up (config below uses relu).
        raise NotImplementedError(act)

    n_batch, l0 = meta['n_batch'], meta['l0']

    def kernel(*refs):
        out_ref = refs[-1]
        it = iter(refs[:-1])
        x = next(it)[...]                                           # (C0, N*L0) f32

        # --- ResBlocks: act(BN(conv1)) -> act(BN(conv2)) -> + input -------------------
        for rb in meta['res']:
            w1 = next(it)[...]; b1 = next(it)[...]; g1 = next(it)[...]; be1 = next(it)[...]
            w2 = next(it)[...]; b2 = next(it)[...]; g2 = next(it)[...]; be2 = next(it)[...]
            x_in = x
            xc, l_mid = _im2col(x, n_batch, l0, rb['k1'], rb['p1'])
            z = jnp.dot(w1, xc, preferred_element_type=jnp.float32) + b1
            z = act_fn(_batchnorm_1pass(z, g1, be1))
            xc2, _ = _im2col(z, n_batch, l_mid, rb['k2'], 0)
            z = jnp.dot(w2, xc2, preferred_element_type=jnp.float32) + b2
            z = act_fn(_batchnorm_1pass(z, g2, be2))
            x = z + x_in

        # --- ConvTranspose1d upsampling stages, sub-pixel (phase-split) form ----------
        # phase r of the running activation holds h[:, P*m + r]; every phase is (C, N*l0).
        phases = [x]
        for up in meta['ups']:
            w_rho = [next(it)[...] for _ in range(up['p_out'])]
            b = next(it)[...]
            new_phases = []
            for rho in range(up['p_out']):
                slabs = [_shift_slab(phases[ri], n_batch, l0, a, l0)
                         for (ri, a) in up['taps'][rho]]
                xc = slabs[0] if len(slabs) == 1 else jnp.concatenate(slabs, axis=0)
                z = jnp.dot(w_rho[rho], xc, preferred_element_type=jnp.float32) + b
                new_phases.append(act_fn(z))
            phases = new_phases

        out = phases[0] if len(phases) == 1 else jnp.concatenate(phases, axis=0)
        out_ref[...] = out                                          # (P_final*Cout, N*l0)

    return kernel


# -----------------------------------------------------------------------------
# Host-side weight packing (done ONCE, not per forward call)
# -----------------------------------------------------------------------------
def prepare_packed_params(params, *, c_in, n_batch, l_in, stride, padding, res_padding, act):
    arrays = []
    res_meta = []
    c_cur = c_in
    for rb in params['res_blocks']:
        w1 = rb['w1']; c_mid, c1, k1 = w1.shape
        w2 = rb['w2']; c2, _, k2 = w2.shape
        assert c1 == c_cur and c2 == c_cur
        l_mid = l_in + 2 * res_padding - k1 + 1
        assert l_mid - k2 + 1 == l_in, "ResBlock must preserve length for the residual add"
        arrays += [
            jnp.transpose(w1, (0, 2, 1)).reshape(c_mid, k1 * c1),   # (Cout, K*Cin), k-major
            rb['b1'][:, None], rb['g1'][:, None], rb['be1'][:, None],
            jnp.transpose(w2, (0, 2, 1)).reshape(c2, k2 * c_mid),
            rb['b2'][:, None], rb['g2'][:, None], rb['be2'][:, None],
        ]
        res_meta.append({'k1': k1, 'p1': res_padding, 'k2': k2})

    ups_meta = []
    phases = 1
    for up in params['ups']:
        w = up['w']                                                 # (Cin, Cout, K)
        c_in_u, c_out_u, k = w.shape
        assert c_in_u == c_cur
        # Sub-pixel phase split with uniform phase lengths requires K == stride + 2*padding.
        assert k == stride + 2 * padding, \
            "sub-pixel ConvTranspose decomposition assumes kernel == stride + 2*padding"
        p_out = phases * stride
        taps_per_phase = []
        for rho in range(p_out):
            taps, blocks = [], []
            for kk in range(k):
                if (rho - kk + padding) % stride == 0:
                    t = (rho - kk + padding) // stride
                    taps.append((t % phases, t // phases))          # (input phase, lane offset)
                    blocks.append(jnp.transpose(w[:, :, kk]))       # (Cout, Cin)
            taps_per_phase.append(tuple(taps))
            arrays.append(blocks[0] if len(blocks) == 1 else jnp.concatenate(blocks, axis=1))
        arrays.append(up['b'][:, None])
        ups_meta.append({'p_out': p_out, 'taps': tuple(taps_per_phase)})
        phases = p_out
        c_cur = c_out_u

    meta = {'act': act, 'n_batch': n_batch, 'l0': l_in,
            'res': res_meta, 'ups': ups_meta,
            'p_final': phases, 'c_final': c_cur}
    return {'meta': meta, 'arrays': arrays}


# -----------------------------------------------------------------------------
# Parameters (deterministic init, PyTorch-like shapes/bounds)
# -----------------------------------------------------------------------------
def init_params(key, channels, kernels, n_res_block, n_res_channel, res_kernels):
    def uniform(k, shape, fan_in):
        bound = 1.0 / float(np.sqrt(fan_in))
        return jax.random.uniform(k, shape, jnp.float32, -bound, bound)

    keys = iter(jax.random.split(key, 64))
    params = {'res_blocks': [], 'ups': []}
    c0 = channels[0]
    for _ in range(n_res_block):
        fan1 = c0 * res_kernels[0]
        fan2 = n_res_channel * res_kernels[1]
        params['res_blocks'].append(dict(
            w1=uniform(next(keys), (n_res_channel, c0, res_kernels[0]), fan1),
            b1=uniform(next(keys), (n_res_channel,), fan1),
            g1=jnp.ones((n_res_channel,), jnp.float32),
            be1=jnp.zeros((n_res_channel,), jnp.float32),
            w2=uniform(next(keys), (c0, n_res_channel, res_kernels[1]), fan2),
            b2=uniform(next(keys), (c0,), fan2),
            g2=jnp.ones((c0,), jnp.float32),
            be2=jnp.zeros((c0,), jnp.float32),
        ))
    prev = c0
    for idx, chn in enumerate(channels[1:]):       # use_proj=False -> all of channels[1:]
        k = kernels[idx]
        fan = prev * k
        params['ups'].append(dict(
            w=uniform(next(keys), (prev, chn, k), fan),   # ConvTranspose1d weight (Cin, Cout, K)
            b=uniform(next(keys), (chn,), fan),
        ))
        prev = chn
    return params


# -----------------------------------------------------------------------------
# Forward: one fused pallas_call + cheap wrapper-side layout plumbing
# -----------------------------------------------------------------------------
def conv1d_decoder_forward(packed, x_ncl):
    meta = packed['meta']
    n, c0, l0 = x_ncl.shape
    assert n == meta['n_batch'] and l0 == meta['l0']
    x2d = jnp.transpose(x_ncl, (1, 0, 2)).reshape(c0, n * l0)       # (C0, N*L0), lane-dense

    inputs = [x2d] + list(packed['arrays'])
    p_fin, c_fin = meta['p_final'], meta['c_final']
    vmem = pl.BlockSpec(memory_space=pltpu.MemorySpace.VMEM)        # tiny: whole-array resident

    out2d = pl.pallas_call(
        _build_decoder_kernel(meta),
        out_shape=jax.ShapeDtypeStruct((p_fin * c_fin, n * l0), jnp.float32),
        in_specs=[vmem] * len(inputs),
        out_specs=vmem,
        compiler_params=pltpu.CompilerParams(vmem_limit_bytes=32 * 1024 * 1024),
    )(*inputs)

    # De-interleave the sub-pixel phases: out[n, c, p_fin*m + rho] = out2d[rho*c_fin + c, n*l0 + m]
    out = out2d.reshape(p_fin, c_fin, n, l0).transpose(2, 1, 3, 0).reshape(n, c_fin, l0 * p_fin)
    return out


# -----------------------------------------------------------------------------
# Pure-JAX reference (for correctness check)
# -----------------------------------------------------------------------------
def _ref_conv1d(x, w, b, padding):
    out = lax.conv_general_dilated(x, w, window_strides=(1,), padding=[(padding, padding)],
                                   dimension_numbers=('NCH', 'OIH', 'NCH'),
                                   precision=lax.Precision.HIGHEST)
    return out + b[None, :, None]


def _ref_convtranspose1d(x, w, b, stride, padding):
    c_in, c_out, k = w.shape
    rhs = jnp.flip(jnp.transpose(w, (1, 0, 2)), axis=2)
    out = lax.conv_general_dilated(x, rhs, window_strides=(1,),
                                   padding=[(k - 1 - padding, k - 1 - padding)],
                                   lhs_dilation=(stride,),
                                   dimension_numbers=('NCH', 'OIH', 'NCH'),
                                   precision=lax.Precision.HIGHEST)
    return out + b[None, :, None]


def _ref_bn(x, gamma, beta, eps=1e-5):
    mean = jnp.mean(x, axis=(0, 2), keepdims=True)
    var = jnp.mean(jnp.square(x - mean), axis=(0, 2), keepdims=True)
    return (x - mean) * lax.rsqrt(var + eps) * gamma[None, :, None] + beta[None, :, None]


def reference_forward(params, x, *, res_padding, stride, padding):
    relu = lambda v: jnp.maximum(v, 0.0)
    h = x
    for rb in params['res_blocks']:
        xi = h
        h = relu(_ref_bn(_ref_conv1d(h, rb['w1'], rb['b1'], res_padding), rb['g1'], rb['be1']))
        h = relu(_ref_bn(_ref_conv1d(h, rb['w2'], rb['b2'], 0), rb['g2'], rb['be2']))
        h = h + xi
    for up in params['ups']:
        h = relu(_ref_convtranspose1d(h, up['w'], up['b'], stride, padding))
    return h


# -----------------------------------------------------------------------------
if __name__ == "__main__":
    # Conv1dDecoder(channels=[4,8,4], kernels=[4,4], stride=2, padding=1,
    #               n_res_block=1, n_res_channel=8, res_kernels=[3,1], res_padding=1,
    #               act='relu', use_bn=False, use_proj=False)
    channels = [4, 8, 4]
    kernels = [4, 4]
    stride = 2
    padding = 1
    n_res_block = 1
    n_res_channel = 8
    res_kernels = [3, 1]
    res_padding = 1
    act = 'relu'

    N, L = 2, 8
    key = jax.random.PRNGKey(0)
    pkey, xkey = jax.random.split(key)
    params = init_params(pkey, channels, kernels, n_res_block, n_res_channel, res_kernels)
    x = jax.random.normal(xkey, (N, channels[0], L), jnp.float32)

    packed = prepare_packed_params(params, c_in=channels[0], n_batch=N, l_in=L,
                                   stride=stride, padding=padding,
                                   res_padding=res_padding, act=act)

    out = conv1d_decoder_forward(packed, x)
    out = jax.block_until_ready(out)

    ref = reference_forward(params, x, res_padding=res_padding, stride=stride, padding=padding)
    ref = jax.block_until_ready(ref)

    expected_len = L
    for kk in kernels:
        expected_len = (expected_len - 1) * stride - 2 * padding + kk
    assert out.shape == (N, channels[-1], expected_len), out.shape
    assert np.allclose(np.asarray(out), np.asarray(ref), rtol=2e-2, atol=2e-2), \
        "Pallas output does not match JAX reference"

    print("KERNEL_OK")
</pallas_src>

<mosaic_0001>
module attributes {stable_mosaic.version = 11 : i64} {
  func.func @kernel(%arg0: memref<4x16xf32, #tpu.memory_space<vmem>>, %arg1: memref<8x12xf32, #tpu.memory_space<vmem>>, %arg2: memref<8x1xf32, #tpu.memory_space<vmem>>, %arg3: memref<8x1xf32, #tpu.memory_space<vmem>>, %arg4: memref<8x1xf32, #tpu.memory_space<vmem>>, %arg5: memref<4x8xf32, #tpu.memory_space<vmem>>, %arg6: memref<4x1xf32, #tpu.memory_space<vmem>>, %arg7: memref<4x1xf32, #tpu.memory_space<vmem>>, %arg8: memref<4x1xf32, #tpu.memory_space<vmem>>, %arg9: memref<8x8xf32, #tpu.memory_space<vmem>>, %arg10: memref<8x8xf32, #tpu.memory_space<vmem>>, %arg11: memref<8x1xf32, #tpu.memory_space<vmem>>, %arg12: memref<4x16xf32, #tpu.memory_space<vmem>>, %arg13: memref<4x16xf32, #tpu.memory_space<vmem>>, %arg14: memref<4x16xf32, #tpu.memory_space<vmem>>, %arg15: memref<4x16xf32, #tpu.memory_space<vmem>>, %arg16: memref<4x1xf32, #tpu.memory_space<vmem>>, %arg17: memref<16x16xf32, #tpu.memory_space<vmem>>) attributes {dimension_semantics = [], scalar_prefetch = 0 : i64, scratch_operands = 0 : i64, tpu.core_type = #tpu.core_type<tc>} {
    %c0 = arith.constant 0 : index
    %c0_0 = arith.constant 0 : index
    %0 = vector.load %arg0[%c0, %c0_0] : memref<4x16xf32, #tpu.memory_space<vmem>>, vector<4x16xf32>
    %c0_1 = arith.constant 0 : index
    %c0_2 = arith.constant 0 : index
    %1 = vector.load %arg1[%c0_1, %c0_2] : memref<8x12xf32, #tpu.memory_space<vmem>>, vector<8x12xf32>
    %c0_3 = arith.constant 0 : index
    %c0_4 = arith.constant 0 : index
    %2 = vector.load %arg2[%c0_3, %c0_4] : memref<8x1xf32, #tpu.memory_space<vmem>>, vector<8x1xf32>
    %c0_5 = arith.constant 0 : index
    %c0_6 = arith.constant 0 : index
    %3 = vector.load %arg3[%c0_5, %c0_6] : memref<8x1xf32, #tpu.memory_space<vmem>>, vector<8x1xf32>
    %c0_7 = arith.constant 0 : index
    %c0_8 = arith.constant 0 : index
    %4 = vector.load %arg4[%c0_7, %c0_8] : memref<8x1xf32, #tpu.memory_space<vmem>>, vector<8x1xf32>
    %c0_9 = arith.constant 0 : index
    %c0_10 = arith.constant 0 : index
    %5 = vector.load %arg5[%c0_9, %c0_10] : memref<4x8xf32, #tpu.memory_space<vmem>>, vector<4x8xf32>
    %c0_11 = arith.constant 0 : index
    %c0_12 = arith.constant 0 : index
    %6 = vector.load %arg6[%c0_11, %c0_12] : memref<4x1xf32, #tpu.memory_space<vmem>>, vector<4x1xf32>
    %c0_13 = arith.constant 0 : index
    %c0_14 = arith.constant 0 : index
    %7 = vector.load %arg7[%c0_13, %c0_14] : memref<4x1xf32, #tpu.memory_space<vmem>>, vector<4x1xf32>
    %c0_15 = arith.constant 0 : index
    %c0_16 = arith.constant 0 : index
    %8 = vector.load %arg8[%c0_15, %c0_16] : memref<4x1xf32, #tpu.memory_space<vmem>>, vector<4x1xf32>
    %9 = vector.extract_strided_slice %0 {offsets = [0, 0], sizes = [4, 8], strides = [1, 1]} : vector<4x16xf32> to vector<4x8xf32>
    %cst = arith.constant 0.000000e+00 : f32
    %10 = vector.broadcast %cst : f32 to vector<4x1xf32>
    %11 = vector.extract_strided_slice %9 {offsets = [0, 0], sizes = [4, 7], strides = [1, 1]} : vector<4x8xf32> to vector<4x7xf32>
    %12 = tpu.concatenate %10, %11 in 1 : vector<4x1xf32>, vector<4x7xf32> -> vector<4x8xf32>
    %13 = vector.extract_strided_slice %0 {offsets = [0, 8], sizes = [4, 8], strides = [1, 1]} : vector<4x16xf32> to vector<4x8xf32>
    %cst_17 = arith.constant 0.000000e+00 : f32
    %14 = vector.broadcast %cst_17 : f32 to vector<4x1xf32>
    %15 = vector.extract_strided_slice %13 {offsets = [0, 0], sizes = [4, 7], strides = [1, 1]} : vector<4x8xf32> to vector<4x7xf32>
    %16 = tpu.concatenate %14, %15 in 1 : vector<4x1xf32>, vector<4x7xf32> -> vector<4x8xf32>
    %17 = tpu.concatenate %12, %16 in 1 : vector<4x8xf32>, vector<4x8xf32> -> vector<4x16xf32>
    %18 = vector.extract_strided_slice %0 {offsets = [0, 0], sizes = [4, 8], strides = [1, 1]} : vector<4x16xf32> to vector<4x8xf32>
    %19 = vector.extract_strided_slice %18 {offsets = [0, 1], sizes = [4, 7], strides = [1, 1]} : vector<4x8xf32> to vector<4x7xf32>
    %cst_18 = arith.constant 0.000000e+00 : f32
    %20 = vector.broadcast %cst_18 : f32 to vector<4x1xf32>
    %21 = tpu.concatenate %19, %20 in 1 : vector<4x7xf32>, vector<4x1xf32> -> vector<4x8xf32>
    %22 = vector.extract_strided_slice %0 {offsets = [0, 8], sizes = [4, 8], strides = [1, 1]} : vector<4x16xf32> to vector<4x8xf32>
    %23 = vector.extract_strided_slice %22 {offsets = [0, 1], sizes = [4, 7], strides = [1, 1]} : vector<4x8xf32> to vector<4x7xf32>
    %cst_19 = arith.constant 0.000000e+00 : f32
    %24 = vector.broadcast %cst_19 : f32 to vector<4x1xf32>
    %25 = tpu.concatenate %23, %24 in 1 : vector<4x7xf32>, vector<4x1xf32> -> vector<4x8xf32>
    %26 = tpu.concatenate %21, %25 in 1 : vector<4x8xf32>, vector<4x8xf32> -> vector<4x16xf32>
    %27 = tpu.concatenate %17, %0, %26 in 0 : vector<4x16xf32>, vector<4x16xf32>, vector<4x16xf32> -> vector<12x16xf32>
    %cst_20 = arith.constant dense<0.000000e+00> : vector<8x16xf32>
    %28 = tpu.matmul %1, %27, %cst_20 {dimension_numbers = #tpu.dot_dimension_numbers<[1], [0], [0], [1], [0, 0, 1, 1], [], []>} : vector<8x12xf32>, vector<12x16xf32>, vector<8x16xf32> -> vector<8x16xf32>
    %29 = vector.broadcast %2 : vector<8x1xf32> to vector<8x16xf32>
    %30 = arith.addf %28, %29 : vector<8x16xf32>
    %cst_21 = arith.constant dense<0.000000e+00> : vector<8xf32>
    %31 = vector.multi_reduction <add>, %30, %cst_21 [1] : vector<8x16xf32> to vector<8xf32>
    %32 = vector.shape_cast %31 : vector<8xf32> to vector<8x1xf32>
    %cst_22 = arith.constant 6.250000e-02 : f32
    %33 = vector.broadcast %cst_22 : f32 to vector<8x1xf32>
    %34 = arith.mulf %32, %33 : vector<8x1xf32>
    %35 = arith.mulf %30, %30 : vector<8x16xf32>
    %cst_23 = arith.constant dense<0.000000e+00> : vector<8xf32>
    %36 = vector.multi_reduction <add>, %35, %cst_23 [1] : vector<8x16xf32> to vector<8xf32>
    %37 = vector.shape_cast %36 : vector<8xf32> to vector<8x1xf32>
    %cst_24 = arith.constant 6.250000e-02 : f32
    %38 = vector.broadcast %cst_24 : f32 to vector<8x1xf32>
    %39 = arith.mulf %37, %38 : vector<8x1xf32>
    %40 = arith.mulf %34, %34 : vector<8x1xf32>
    %41 = arith.subf %39, %40 : vector<8x1xf32>
    %42 = vector.broadcast %34 : vector<8x1xf32> to vector<8x16xf32>
    %43 = arith.subf %30, %42 : vector<8x16xf32>
    %cst_25 = arith.constant 9.99999974E-6 : f32
    %44 = vector.broadcast %cst_25 : f32 to vector<8x1xf32>
    %45 = arith.addf %41, %44 : vector<8x1xf32>
    %46 = math.rsqrt %45 : vector<8x1xf32>
    %47 = vector.broadcast %46 : vector<8x1xf32> to vector<8x16xf32>
    %48 = arith.mulf %43, %47 : vector<8x16xf32>
    %49 = vector.broadcast %3 : vector<8x1xf32> to vector<8x16xf32>
    %50 = arith.mulf %48, %49 : vector<8x16xf32>
    %51 = vector.broadcast %4 : vector<8x1xf32> to vector<8x16xf32>
    %52 = arith.addf %50, %51 : vector<8x16xf32>
    %cst_26 = arith.constant 0.000000e+00 : f32
    %53 = vector.broadcast %cst_26 : f32 to vector<8x16xf32>
    %54 = arith.maximumf %52, %53 : vector<8x16xf32>
    %cst_27 = arith.constant dense<0.000000e+00> : vector<4x16xf32>
    %55 = tpu.matmul %5, %54, %cst_27 {dimension_numbers = #tpu.dot_dimension_numbers<[1], [0], [0], [1], [0, 0, 1, 1], [], []>} : vector<4x8xf32>, vector<8x16xf32>, vector<4x16xf32> -> vector<4x16xf32>
    %56 = vector.broadcast %6 : vector<4x1xf32> to vector<4x16xf32>
    %57 = arith.addf %55, %56 : vector<4x16xf32>
    %cst_28 = arith.constant dense<0.000000e+00> : vector<4xf32>
    %58 = vector.multi_reduction <add>, %57, %cst_28 [1] : vector<4x16xf32> to vector<4xf32>
    %59 = vector.shape_cast %58 : vector<4xf32> to vector<4x1xf32>
    %cst_29 = arith.constant 6.250000e-02 : f32
    %60 = vector.broadcast %cst_29 : f32 to vector<4x1xf32>
    %61 = arith.mulf %59, %60 : vector<4x1xf32>
    %62 = arith.mulf %57, %57 : vector<4x16xf32>
    %cst_30 = arith.constant dense<0.000000e+00> : vector<4xf32>
    %63 = vector.multi_reduction <add>, %62, %cst_30 [1] : vector<4x16xf32> to vector<4xf32>
    %64 = vector.shape_cast %63 : vector<4xf32> to vector<4x1xf32>
    %cst_31 = arith.constant 6.250000e-02 : f32
    %65 = vector.broadcast %cst_31 : f32 to vector<4x1xf32>
    %66 = arith.mulf %64, %65 : vector<4x1xf32>
    %67 = arith.mulf %61, %61 : vector<4x1xf32>
    %68 = arith.subf %66, %67 : vector<4x1xf32>
    %69 = vector.broadcast %61 : vector<4x1xf32> to vector<4x16xf32>
    %70 = arith.subf %57, %69 : vector<4x16xf32>
    %cst_32 = arith.constant 9.99999974E-6 : f32
    %71 = vector.broadcast %cst_32 : f32 to vector<4x1xf32>
    %72 = arith.addf %68, %71 : vector<4x1xf32>
    %73 = math.rsqrt %72 : vector<4x1xf32>
    %74 = vector.broadcast %73 : vector<4x1xf32> to vector<4x16xf32>
    %75 = arith.mulf %70, %74 : vector<4x16xf32>
    %76 = vector.broadcast %7 : vector<4x1xf32> to vector<4x16xf32>
    %77 = arith.mulf %75, %76 : vector<4x16xf32>
    %78 = vector.broadcast %8 : vector<4x1xf32> to vector<4x16xf32>
    %79 = arith.addf %77, %78 : vector<4x16xf32>
    %cst_33 = arith.constant 0.000000e+00 : f32
    %80 = vector.broadcast %cst_33 : f32 to vector<4x16xf32>
    %81 = arith.maximumf %79, %80 : vector<4x16xf32>
    %82 = arith.addf %81, %0 : vector<4x16xf32>
    %c0_34 = arith.constant 0 : index
    %c0_35 = arith.constant 0 : index
    %83 = vector.load %arg9[%c0_34, %c0_35] : memref<8x8xf32, #tpu.memory_space<vmem>>, vector<8x8xf32>
    %c0_36 = arith.constant 0 : index
    %c0_37 = arith.constant 0 : index
    %84 = vector.load %arg10[%c0_36, %c0_37] : memref<8x8xf32, #tpu.memory_space<vmem>>, vector<8x8xf32>
    %c0_38 = arith.constant 0 : index
    %c0_39 = arith.constant 0 : index
    %85 = vector.load %arg11[%c0_38, %c0_39] : memref<8x1xf32, #tpu.memory_space<vmem>>, vector<8x1xf32>
    %86 = vector.extract_strided_slice %82 {offsets = [0, 0], sizes = [4, 8], strides = [1, 1]} : vector<4x16xf32> to vector<4x8xf32>
    %cst_40 = arith.constant 0.000000e+00 : f32
    %87 = vector.broadcast %cst_40 : f32 to vector<4x1xf32>
    %88 = vector.extract_strided_slice %86 {offsets = [0, 0], sizes = [4, 7], strides = [1, 1]} : vector<4x8xf32> to vector<4x7xf32>
    %89 = tpu.concatenate %87, %88 in 1 : vector<4x1xf32>, vector<4x7xf32> -> vector<4x8xf32>
    %90 = vector.extract_strided_slice %82 {offsets = [0, 8], sizes = [4, 8], strides = [1, 1]} : vector<4x16xf32> to vector<4x8xf32>
    %cst_41 = arith.constant 0.000000e+00 : f32
    %91 = vector.broadcast %cst_41 : f32 to vector<4x1xf32>
    %92 = vector.extract_strided_slice %90 {offsets = [0, 0], sizes = [4, 7], strides = [1, 1]} : vector<4x8xf32> to vector<4x7xf32>
    %93 = tpu.concatenate %91, %92 in 1 : vector<4x1xf32>, vector<4x7xf32> -> vector<4x8xf32>
    %94 = tpu.concatenate %89, %93 in 1 : vector<4x8xf32>, vector<4x8xf32> -> vector<4x16xf32>
    %95 = tpu.concatenate %82, %94 in 0 : vector<4x16xf32>, vector<4x16xf32> -> vector<8x16xf32>
    %cst_42 = arith.constant dense<0.000000e+00> : vector<8x16xf32>
    %96 = tpu.matmul %83, %95, %cst_42 {dimension_numbers = #tpu.dot_dimension_numbers<[1], [0], [0], [1], [0, 0, 1, 1], [], []>} : vector<8x8xf32>, vector<8x16xf32>, vector<8x16xf32> -> vector<8x16xf32>
    %97 = vector.broadcast %85 : vector<8x1xf32> to vector<8x16xf32>
    %98 = arith.addf %96, %97 : vector<8x16xf32>
    %cst_43 = arith.constant 0.000000e+00 : f32
    %99 = vector.broadcast %cst_43 : f32 to vector<8x16xf32>
    %100 = arith.maximumf %98, %99 : vector<8x16xf32>
    %101 = vector.extract_strided_slice %82 {offsets = [0, 0], sizes = [4, 8], strides = [1, 1]} : vector<4x16xf32> to vector<4x8xf32>
    %102 = vector.extract_strided_slice %101 {offsets = [0, 1], sizes = [4, 7], strides = [1, 1]} : vector<4x8xf32> to vector<4x7xf32>
    %cst_44 = arith.constant 0.000000e+00 : f32
    %103 = vector.broadcast %cst_44 : f32 to vector<4x1xf32>
    %104 = tpu.concatenate %102, %103 in 1 : vector<4x7xf32>, vector<4x1xf32> -> vector<4x8xf32>
    %105 = vector.extract_strided_slice %82 {offsets = [0, 8], sizes = [4, 8], strides = [1, 1]} : vector<4x16xf32> to vector<4x8xf32>
    %106 = vector.extract_strided_slice %105 {offsets = [0, 1], sizes = [4, 7], strides = [1, 1]} : vector<4x8xf32> to vector<4x7xf32>
    %cst_45 = arith.constant 0.000000e+00 : f32
    %107 = vector.broadcast %cst_45 : f32 to vector<4x1xf32>
    %108 = tpu.concatenate %106, %107 in 1 : vector<4x7xf32>, vector<4x1xf32> -> vector<4x8xf32>
    %109 = tpu.concatenate %104, %108 in 1 : vector<4x8xf32>, vector<4x8xf32> -> vector<4x16xf32>
    %110 = tpu.concatenate %109, %82 in 0 : vector<4x16xf32>, vector<4x16xf32> -> vector<8x16xf32>
    %cst_46 = arith.constant dense<0.000000e+00> : vector<8x16xf32>
    %111 = tpu.matmul %84, %110, %cst_46 {dimension_numbers = #tpu.dot_dimension_numbers<[1], [0], [0], [1], [0, 0, 1, 1], [], []>} : vector<8x8xf32>, vector<8x16xf32>, vector<8x16xf32> -> vector<8x16xf32>
    %112 = vector.broadcast %85 : vector<8x1xf32> to vector<8x16xf32>
    %113 = arith.addf %111, %112 : vector<8x16xf32>
    %cst_47 = arith.constant 0.000000e+00 : f32
    %114 = vector.broadcast %cst_47 : f32 to vector<8x16xf32>
    %115 = arith.maximumf %113, %114 : vector<8x16xf32>
    %c0_48 = arith.constant 0 : index
    %c0_49 = arith.constant 0 : index
    %116 = vector.load %arg12[%c0_48, %c0_49] : memref<4x16xf32, #tpu.memory_space<vmem>>, vector<4x16xf32>
    %c0_50 = arith.constant 0 : index
    %c0_51 = arith.constant 0 : index
    %117 = vector.load %arg13[%c0_50, %c0_51] : memref<4x16xf32, #tpu.memory_space<vmem>>, vector<4x16xf32>
    %c0_52 = arith.constant 0 : index
    %c0_53 = arith.constant 0 : index
    %118 = vector.load %arg14[%c0_52, %c0_53] : memref<4x16xf32, #tpu.memory_space<vmem>>, vector<4x16xf32>
    %c0_54 = arith.constant 0 : index
    %c0_55 = arith.constant 0 : index
    %119 = vector.load %arg15[%c0_54, %c0_55] : memref<4x16xf32, #tpu.memory_space<vmem>>, vector<4x16xf32>
    %c0_56 = arith.constant 0 : index
    %c0_57 = arith.constant 0 : index
    %120 = vector.load %arg16[%c0_56, %c0_57] : memref<4x1xf32, #tpu.memory_space<vmem>>, vector<4x1xf32>
    %121 = vector.extract_strided_slice %115 {offsets = [0, 0], sizes = [8, 8], strides = [1, 1]} : vector<8x16xf32> to vector<8x8xf32>
    %cst_58 = arith.constant 0.000000e+00 : f32
    %122 = vector.broadcast %cst_58 : f32 to vector<8x1xf32>
    %123 = vector.extract_strided_slice %121 {offsets = [0, 0], sizes = [8, 7], strides = [1, 1]} : vector<8x8xf32> to vector<8x7xf32>
    %124 = tpu.concatenate %122, %123 in 1 : vector<8x1xf32>, vector<8x7xf32> -> vector<8x8xf32>
    %125 = vector.extract_strided_slice %115 {offsets = [0, 8], sizes = [8, 8], strides = [1, 1]} : vector<8x16xf32> to vector<8x8xf32>
    %cst_59 = arith.constant 0.000000e+00 : f32
    %126 = vector.broadcast %cst_59 : f32 to vector<8x1xf32>
    %127 = vector.extract_strided_slice %125 {offsets = [0, 0], sizes = [8, 7], strides = [1, 1]} : vector<8x8xf32> to vector<8x7xf32>
    %128 = tpu.concatenate %126, %127 in 1 : vector<8x1xf32>, vector<8x7xf32> -> vector<8x8xf32>
    %129 = tpu.concatenate %124, %128 in 1 : vector<8x8xf32>, vector<8x8xf32> -> vector<8x16xf32>
    %130 = tpu.concatenate %100, %129 in 0 : vector<8x16xf32>, vector<8x16xf32> -> vector<16x16xf32>
    %cst_60 = arith.constant dense<0.000000e+00> : vector<4x16xf32>
    %131 = tpu.matmul %116, %130, %cst_60 {dimension_numbers = #tpu.dot_dimension_numbers<[1], [0], [0], [1], [0, 0, 1, 1], [], []>} : vector<4x16xf32>, vector<16x16xf32>, vector<4x16xf32> -> vector<4x16xf32>
    %132 = vector.broadcast %120 : vector<4x1xf32> to vector<4x16xf32>
    %133 = arith.addf %131, %132 : vector<4x16xf32>
    %cst_61 = arith.constant 0.000000e+00 : f32
    %134 = vector.broadcast %cst_61 : f32 to vector<4x16xf32>
    %135 = arith.maximumf %133, %134 : vector<4x16xf32>
    %136 = tpu.concatenate %115, %100 in 0 : vector<8x16xf32>, vector<8x16xf32> -> vector<16x16xf32>
    %cst_62 = arith.constant dense<0.000000e+00> : vector<4x16xf32>
    %137 = tpu.matmul %117, %136, %cst_62 {dimension_numbers = #tpu.dot_dimension_numbers<[1], [0], [0], [1], [0, 0, 1, 1], [], []>} : vector<4x16xf32>, vector<16x16xf32>, vector<4x16xf32> -> vector<4x16xf32>
    %138 = vector.broadcast %120 : vector<4x1xf32> to vector<4x16xf32>
    %139 = arith.addf %137, %138 : vector<4x16xf32>
    %cst_63 = arith.constant 0.000000e+00 : f32
    %140 = vector.broadcast %cst_63 : f32 to vector<4x16xf32>
    %141 = arith.maximumf %139, %140 : vector<4x16xf32>
    %142 = tpu.concatenate %115, %100 in 0 : vector<8x16xf32>, vector<8x16xf32> -> vector<16x16xf32>
    %cst_64 = arith.constant dense<0.000000e+00> : vector<4x16xf32>
    %143 = tpu.matmul %118, %142, %cst_64 {dimension_numbers = #tpu.dot_dimension_numbers<[1], [0], [0], [1], [0, 0, 1, 1], [], []>} : vector<4x16xf32>, vector<16x16xf32>, vector<4x16xf32> -> vector<4x16xf32>
    %144 = vector.broadcast %120 : vector<4x1xf32> to vector<4x16xf32>
    %145 = arith.addf %143, %144 : vector<4x16xf32>
    %cst_65 = arith.constant 0.000000e+00 : f32
    %146 = vector.broadcast %cst_65 : f32 to vector<4x16xf32>
    %147 = arith.maximumf %145, %146 : vector<4x16xf32>
    %148 = vector.extract_strided_slice %100 {offsets = [0, 0], sizes = [8, 8], strides = [1, 1]} : vector<8x16xf32> to vector<8x8xf32>
    %149 = vector.extract_strided_slice %148 {offsets = [0, 1], sizes = [8, 7], strides = [1, 1]} : vector<8x8xf32> to vector<8x7xf32>
    %cst_66 = arith.constant 0.000000e+00 : f32
    %150 = vector.broadcast %cst_66 : f32 to vector<8x1xf32>
    %151 = tpu.concatenate %149, %150 in 1 : vector<8x7xf32>, vector<8x1xf32> -> vector<8x8xf32>
    %152 = vector.extract_strided_slice %100 {offsets = [0, 8], sizes = [8, 8], strides = [1, 1]} : vector<8x16xf32> to vector<8x8xf32>
    %153 = vector.extract_strided_slice %152 {offsets = [0, 1], sizes = [8, 7], strides = [1, 1]} : vector<8x8xf32> to vector<8x7xf32>
    %cst_67 = arith.constant 0.000000e+00 : f32
    %154 = vector.broadcast %cst_67 : f32 to vector<8x1xf32>
    %155 = tpu.concatenate %153, %154 in 1 : vector<8x7xf32>, vector<8x1xf32> -> vector<8x8xf32>
    %156 = tpu.concatenate %151, %155 in 1 : vector<8x8xf32>, vector<8x8xf32> -> vector<8x16xf32>
    %157 = tpu.concatenate %156, %115 in 0 : vector<8x16xf32>, vector<8x16xf32> -> vector<16x16xf32>
    %cst_68 = arith.constant dense<0.000000e+00> : vector<4x16xf32>
    %158 = tpu.matmul %119, %157, %cst_68 {dimension_numbers = #tpu.dot_dimension_numbers<[1], [0], [0], [1], [0, 0, 1, 1], [], []>} : vector<4x16xf32>, vector<16x16xf32>, vector<4x16xf32> -> vector<4x16xf32>
    %159 = vector.broadcast %120 : vector<4x1xf32> to vector<4x16xf32>
    %160 = arith.addf %158, %159 : vector<4x16xf32>
    %cst_69 = arith.constant 0.000000e+00 : f32
    %161 = vector.broadcast %cst_69 : f32 to vector<4x16xf32>
    %162 = arith.maximumf %160, %161 : vector<4x16xf32>
    %163 = tpu.concatenate %135, %141, %147, %162 in 0 : vector<4x16xf32>, vector<4x16xf32>, vector<4x16xf32>, vector<4x16xf32> -> vector<16x16xf32>
    %c0_70 = arith.constant 0 : index
    %c0_71 = arith.constant 0 : index
    %164 = vector.load %arg17[%c0_70, %c0_71] : memref<16x16xf32, #tpu.memory_space<vmem>>, vector<16x16xf32>
    tpu.vector_store %arg17[%c0_70, %c0_71], %163 {strides = array<i32>} : memref<16x16xf32, #tpu.memory_space<vmem>>, vector<16x16xf32>,
    return
  }
}

</mosaic_0001>

<bundles_post_ra>
// kernel: tpu_custom_call.1
= control target key start
LH: loop header
LB: loop body
LE: loop exit
PB: predicated region body
PF: predicated region fallthrough
CT: control target
= control target key end

     0   :  { %s1262_s0 = inlined_call_operand.vmem [shape: f32[4,16], index: 0, kind: input, shape index: {}]   ;;  %s1263_s1 = inlined_call_operand.vmem [shape: f32[8,12], index: 1, kind: input, shape index: {}]   ;;  %s1264_s2 = inlined_call_operand.vmem [shape: f32[8,1], index: 2, kind: input, shape index: {}]   ;;  %s1265_s3 = inlined_call_operand.vmem [shape: f32[8,1], index: 3, kind: input, shape index: {}]   ;;  %s1266_s4 = inlined_call_operand.vmem [shape: f32[8,1], index: 4, kind: input, shape index: {}]   ;;  %s1267_s5 = inlined_call_operand.vmem [shape: f32[4,8], index: 5, kind: input, shape index: {}]   ;;  %s1268_s6 = inlined_call_operand.vmem [shape: f32[4,1], index: 6, kind: input, shape index: {}]   ;;  %s1269_s7 = inlined_call_operand.vmem [shape: f32[4,1], index: 7, kind: input, shape index: {}]   ;;  %s1270_s8 = inlined_call_operand.vmem [shape: f32[4,1], index: 8, kind: input, shape index: {}]   ;;  %s1271_s9 = inlined_call_operand.vmem [shape: f32[8,8], index: 9, kind: input, shape index: {}]   ;;  %s1272_s10 = inlined_call_operand.vmem [shape: f32[8,8], index: 10, kind: input, shape index: {}]   ;;  %s1273_s11 = inlined_call_operand.vmem [shape: f32[8,1], index: 11, kind: input, shape index: {}]   ;;  %s1274_s12 = inlined_call_operand.vmem [shape: f32[4,16], index: 12, kind: input, shape index: {}]   ;;  %s1275_s13 = inlined_call_operand.vmem [shape: f32[4,16], index: 13, kind: input, shape index: {}]   ;;  %s1276_s14 = inlined_call_operand.vmem [shape: f32[4,16], index: 14, kind: input, shape index: {}]   ;;  %s1277_s15 = inlined_call_operand.vmem [shape: f32[4,16], index: 15, kind: input, shape index: {}]   ;;  %s1278_s16 = inlined_call_operand.vmem [shape: f32[4,1], index: 16, kind: input, shape index: {}]   ;;  %s1279_s17 = inlined_call_operand.hbm [shape: f32[16,16], index: 17, kind: output, shape index: {}]  }
   0x1   :  { %1280 = sst [smem:[#allocation5_spill]] %s1262_s0 }
   0x2   :  { %1281 = sst [smem:[#allocation6_spill]] %s1263_s1 }
   0x3   :  { %s1282_s26 = sld [smem:[#allocation5_spill]]  ;;  %s1012_s27 = smov 121  }
   0x9   :  { %v1117_v0 = vld [vmem:[%s1282_s26] sm:$0xf] }
   0xa   :  { %72 = vrot.lane.b32.xlu0 %v1117_v0, %s1012_s27 }
   0xb   :  { %22 = vsyncpa [#allocation3], 0  ;;  %s1013_s28 = smov 1   ;;  %s1014_s29 = smov 119   ;;  %v1016_v2 = vmov 0.0|0.0   ;;  %vm70_vm0 = vcmask 7168  }
   0xc   :  { %67 = vrot.lane.b32.xlu1 %v1117_v0, %s1013_s28  ;;  %s1015_s0 = smov 127   ;;  %949 = vmatprep.subr.bf16.mxu0 %v1016_v2  ;;  %vm85_vm1 = vcmask 56320   ;;  %vm1017_vm2 = vmmov 0   ;;  %v1018_v3 = vmov 0.0   ;;  %v1019_v7 = vmov 0   ;;  %s1020_s30 = smov 8  }
   0xd   :  { %903 = vmatprep.mubr.msk.f32.mxu0 %vm1017_vm2, %v1018_v3  ;;  %906 = vmatprep.subr.mxu1 %v1018_v3  ;;  %v59_v9 = vld [vmem:[%s1264_s2] sm:$0xff]  ;;  %vm80_vm3 = vcmask 64512   ;;  %v96_v14 = vrot.slane %v1117_v0, 4  ;;  %vm98_vm4 = vcmask 1043456   ;;  %vm1021_vm5 = vmmov 1   ;;  %s1283_s20 = sld [smem:[#allocation6_spill]] }
   0xe   :  { %87 = vrot.lane.b32.xlu0 %v1117_v0, %s1014_s29  ;;  %908 = vmatprep.mubr.msk.f32.mxu1 %vm1017_vm2, %v1018_v3  ;;  %vm951_vm6 = vmpackc.low %vm98_vm4, %vm1021_vm5  ;;  %vm105_vm7 = vcmask 97280   ;;  %vm182_vm8 = vcmask 130048   ;;  %v61_v30 = vld [vmem:[%s1266_s4] sm:$0xff]  ;;  %vm289_vm9 = vcmask 125952  }
   0xf   :  { %982 = vset.pattern.permute.xlu1 %v1019_v7  ;;  %983 = vset.pattern.permute.xlu0 %v1019_v7  ;;  %v60_v31 = vld [vmem:[%s1265_s3] sm:$0xff] }
  0x10   :  { %v63_v32 = vld [vmem:[%s1268_s6] sm:$0xf] }
  0x11   :  { %v62_v48 = vld [vmem:[%s1267_s5] sm:$0xf] }
  0x12   :  { %82 = vrot.lane.b32.xlu0 %v1117_v0, %s1015_s0  ;;  %v64_v56 = vld [vmem:[%s1269_s7] sm:$0xf] }
  0x13   :  { %v58_v22 = vld [vmem:[%s1283_s20] sm:$0xff] }
  0x14   :  { %v65_v57 = vld [vmem:[%s1270_s8] sm:$0xf] }
  0x7c   :  { %v73_v1 = vpop.permute.xlu0 %72 }
  0x7d   :  { %v75_v5 = vsel %vm70_vm0, 0.0, %v73_v1 }
  0x7e   :  { %v68_v10 = vpop.permute.xlu1 %67 }
  0x7f   :  { %v71_v17 = vsel %vm70_vm0, 0.0, %v68_v10 }
  0x80   :  { %v88_v4 = vpop.permute.xlu0 %87 }
  0x81   :  { %v90_v6 = vsel %vm85_vm1, %v88_v4, 0.0 }
  0x82   :  { %v977_v8 = vpack.i.bf16 %v90_v6, %v75_v5 }
  0x84   :  { %978 = vrot.lane.b32.xlu1 %v977_v8, %s1020_s30  ;;  %v83_v11 = vpop.permute.xlu0 %82 }
  0x85   :  { %v86_v13 = vsel %vm85_vm1, %v83_v11, 0.0 }
  0x88   :  { %102 = vperm.xlu1 %982, %v59_v9  }
  0xf6   :  { %v979_v12 = vpop.permute.xlu1 %978 }
  0xf7   :  { %v981_v15 = vunpack.i.h.bf16 %v979_v12  ;;  %v980_v16 = vunpack.i.l.bf16 %v979_v12 }
  0xf9   :  { %v81_v18 = vsel %vm80_vm3, %v71_v17, %v980_v16  ;;  %v95_v19 = vsel %vm80_vm3, %v86_v13, %v981_v15  ;;  %v321_v15 = vld [vmem:[%s1273_s11] sm:$0xff] }
  0xfa   :  { %v99_v20 = vsel %vm98_vm4, %v81_v18, %v96_v14 }
  0xfb   :  { %v950_v21 = vpack.c.bf16 %v95_v19, %v99_v20 }
  0xfd   :  { %952 = vmatpush3.bf16.msk.msra.mxu0 %vm951_vm6, %v950_v21 }
  0xfe   :  { %916 = vmatprep.subr.mxu0 %v1018_v3 }
 0x100   :  { %904 = vmatmul.mubr.msk.f32.vlgmr.msra.gmra.mrb[0].mxu0 %vm105_vm7, %v58_v22 }
 0x101   :  { %918 = vmatprep.mubr.msk.f32.mxu0 %vm1017_vm2, %v1018_v3 }
 0x107   :  { %v103_v23 = vpop.permute.xlu1 %102 }
 0x1d3   :  { %v178_v24 = vpop.f32.mrb[0].mxu0 }
 0x1d4   :  { %v179_v25 = vadd.f32 %v178_v24, %v103_v23  ;;  %v905_v26 = vpop.f32.mrb[1].mxu0  ;;  %v319_v23 = vld [vmem:[%s1271_s9] sm:$0xff] }
 0x1d6   :  { %v183_v27 = vsel %vm182_vm8, %v179_v25, 0.0  ;;  %v187_v28 = vmul.f32 %v179_v25, %v179_v25 }
 0x1d7   :  { %184 = vadd.xlane.f32.xlu0 %v183_v27 }
 0x1d8   :  { %v188_v29 = vsel %vm182_vm8, %v187_v28, 0.0 }
 0x1d9   :  { %189 = vadd.xlane.f32.xlu1 %v188_v29  ;;  %v320_v29 = vld [vmem:[%s1272_s10] sm:$0xff] }
 0x1ea   :  { %206 = vperm.xlu1 %982, %v61_v30  }
 0x1ed   :  { %200 = vperm.xlu0 %983, %v60_v31  }
 0x1ee   :  { %213 = vperm.xlu1 %982, %v63_v32  }
 0x264   :  { %v185_v33 = vpop.xlane.xlu0 %184 }
 0x265   :  { %v186_v34 = vmul.f32 0.0625, %v185_v33 }
 0x266   :  { %v190_v35 = vpop.xlane.xlu1 %189 }
 0x267   :  { %v192_v36 = vmul.f32 %v186_v34, %v186_v34  ;;  %v191_v37 = vmul.f32 0.0625, %v190_v35  ;;  %v194_v40 = vsub.f32 %v179_v25, %v186_v34 }
 0x269   :  { %v193_v38 = vsub.f32 %v191_v37, %v192_v36 }
 0x26a   :  { %v207_v45 = vpop.permute.xlu1 %206 }
 0x26b   :  { %v195_v39 = vadd.f32 1e-05, %v193_v38 }
 0x26c   :  { %v201_v42 = vpop.permute.xlu0 %200 }
 0x26d   :  { %984 = vrsqrt.f32 %v195_v39 }
 0x26e   :  { %v214_v49 = vpop.permute.xlu1 %213 }
 0x277   :  { %v985_v41 = vpop.eup %984 }
 0x278   :  { %v197_v43 = vmul.f32 %v985_v41, %v194_v40  ;;  %v510_v41 = vld [vmem:[%s1275_s13] sm:$0xf] }
 0x27a   :  { %v203_v44 = vmul.f32 %v201_v42, %v197_v43  ;;  %v513_v42 = vld [vmem:[%s1278_s16] sm:$0xf] }
 0x27c   :  { %v209_v46 = vadd.f32 %v207_v45, %v203_v44 }
 0x27e   :  { %v210_v47 = vmax.f32 %v209_v46, 0.0 }
 0x280   :  { %907 = vmatpush3.msra.mxu1 %v210_v47 }
 0x281   :  { %909 = vmatmul.mubr.msk.f32.vlgmr.msra.gmra.mrb[0].mxu1 %vm80_vm3, %v62_v48  ;;  %911 = vmatprep.subr.mxu1 %v1018_v3 }
 0x282   :  { %913 = vmatprep.mubr.msk.f32.mxu1 %vm1017_vm2, %v1018_v3 }
 0x354   :  { %v285_v50 = vpop.f32.mrb[0].mxu1 }
 0x355   :  { %v286_v51 = vadd.f32 %v285_v50, %v214_v49  ;;  %v910_v52 = vpop.f32.mrb[1].mxu1 }
 0x357   :  { %v290_v53 = vsel %vm289_vm9, %v286_v51, 0.0  ;;  %v294_v54 = vmul.f32 %v286_v51, %v286_v51 }
 0x358   :  { %291 = vadd.xlane.f32.xlu1 %v290_v53 }
 0x359   :  { %v295_v55 = vsel %vm289_vm9, %v294_v54, 0.0 }
 0x35a   :  { %296 = vadd.xlane.f32.xlu0 %v295_v55 }
 0x369   :  { %307 = vperm.xlu1 %982, %v64_v56  }
 0x370   :  { %313 = vperm.xlu0 %983, %v65_v57   ;;  %v509_v57 = vld [vmem:[%s1274_s12] sm:$0xf]  ;;  %s1022_s12 = smov [#allocation2]  }
 0x3e5   :  { %v292_v58 = vpop.xlane.xlu1 %291 }
 0x3e6   :  { %v293_v59 = vmul.f32 0.0625, %v292_v58 }
 0x3e7   :  { %v297_v60 = vpop.xlane.xlu0 %296 }
 0x3e8   :  { %v299_v61 = vmul.f32 %v293_v59, %v293_v59  ;;  %v298_v62 = vmul.f32 0.0625, %v297_v60  ;;  %v301_v4 = vsub.f32 %v286_v51, %v293_v59  ;;  %v511_v60 = vld [vmem:[%s1276_s14] sm:$0xf]  ;;  %s858_s14 = sshll.u32 %s1022_s12, 4  ;;  %s859_s14 = int_to_ptr.vmem [resolvable:$true] %s858_s14 }
 0x3e9   :  { %v308_v7 = vpop.permute.xlu1 %307  ;;  %p993_p1 = scmp.lt.s32.totalorder %s859_s14, %s859_s14 }
 0x3ea   :  { %v300_v63 = vsub.f32 %v298_v62, %v299_v61  ;;  %v512_v61 = vld [vmem:[%s1277_s15] sm:$0xf]  ;;  %s988_s15 = scalar_lea.vmem %s859_s14, 256 }
 0x3eb   :  { %p989_p0 = scmp.ne.s32.totalorder %s859_s14, %s988_s15  ;;  %p994_p2 = scmp.lt.s32.totalorder %s988_s15, %s988_s15 }
 0x3ec   :  { %v302_v1 = vadd.f32 1e-05, %v300_v63 }
 0x3ed   :  { %p995_p3 = por %p994_p2, %p993_p1 }
 0x3ee   :  { %986 = vrsqrt.f32 %v302_v1 }
 0x3ef   :  { %v314_v9 = vpop.permute.xlu0 %313  ;;  %p996_p4 = pnand %p995_p3, %p989_p0 }
 0x3f8   :  { %v987_v5 = vpop.eup %986 }
 0x3f9   :  { %v304_v6 = vmul.f32 %v987_v5, %v301_v4 }
 0x3fb   :  { %v310_v8 = vmul.f32 %v308_v7, %v304_v6 }
 0x3fd   :  { %v316_v10 = vadd.f32 %v314_v9, %v310_v8 }
 0x3ff   :  { %v317_v11 = vmax.f32 %v316_v10, 0.0 }
 0x401   :  { %v318_v12 = vadd.f32 %v317_v11, %v1117_v0 }
 0x403   :  { %327 = vrot.lane.b32.xlu1 %v318_v12, %s1012_s27  ;;  %v432_v27 = vrot.slane %v318_v12, 4 }
 0x407   :  { %423 = vrot.lane.b32.xlu1 %v318_v12, %s1014_s29 }
 0x40b   :  { %323 = vrot.lane.b32.xlu1 %v318_v12, %s1013_s28 }
 0x40f   :  { %419 = vrot.lane.b32.xlu1 %v318_v12, %s1015_s0 }
 0x475   :  { %v328_v13 = vpop.permute.xlu1 %327 }
 0x476   :  { %v330_v14 = vsel %vm70_vm0, 0.0, %v328_v13 }
 0x477   :  { %332 = vrot.lane.b32.xlu1 %v330_v14, %s1020_s30 }
 0x479   :  { %v424_v16 = vpop.permute.xlu1 %423 }
 0x47a   :  { %v426_v0 = vsel %vm85_vm1, %v424_v16, 0.0 }
 0x47b   :  { %342 = vperm.xlu1 %982, %v321_v15   ;;  %428 = vrot.lane.b32.xlu0 %v426_v0, %s1020_s30 }
 0x47d   :  { %v324_v17 = vpop.permute.xlu1 %323 }
 0x47e   :  { %v326_v19 = vsel %vm70_vm0, 0.0, %v324_v17 }
 0x481   :  { %v420_v18 = vpop.permute.xlu1 %419 }
 0x482   :  { %v422_v24 = vsel %vm85_vm1, %v420_v18, 0.0 }
 0x4e9   :  { %v333_v20 = vpop.permute.xlu1 %332 }
 0x4ea   :  { %v335_v21 = vsel %vm80_vm3, %v326_v19, %v333_v20 }
 0x4eb   :  { %v337_v22 = vrot.slane %v335_v21, 4 }
 0x4ed   :  { %v429_v25 = vpop.permute.xlu0 %428  ;;  %v339_v26 = vsel %vm98_vm4, %v318_v12, %v337_v22 }
 0x4ee   :  { %v431_v28 = vsel %vm80_vm3, %v422_v24, %v429_v25  ;;  %912 = vmatpush3.msra.mxu1 %v339_v26 }
 0x4ef   :  { %914 = vmatmul.mubr.msk.f32.vlgmr.msra.gmra.mrb[2].mxu1 %vm80_vm3, %v319_v23  ;;  %v434_v30 = vsel %vm98_vm4, %v431_v28, %v432_v27  ;;  %953 = vmatprep.subr.bf16.mxu1 %v1016_v2 }
 0x4f0   :  { %917 = vmatpush3.msra.mxu0 %v434_v30  ;;  %925 = vmatprep.mubr.msk.f32.mxu1 %vm1017_vm2, %v1018_v3 }
 0x4f1   :  { %919 = vmatmul.mubr.msk.f32.vlgmr.msra.gmra.mrb[2].mxu0 %vm80_vm3, %v320_v29  ;;  %956 = vmatprep.subr.bf16.mxu0 %v1016_v2 }
 0x4f2   :  { %932 = vmatprep.mubr.msk.f32.mxu0 %vm1017_vm2, %v1018_v3 }
 0x4fa   :  { %v343_v31 = vpop.permute.xlu1 %342 }
 0x5c2   :  { %v414_v32 = vpop.f32.mrb[2].mxu1 }
 0x5c3   :  { %v415_v33 = vadd.f32 %v414_v32, %v343_v31  ;;  %v915_v34 = vpop.f32.mrb[3].mxu1 }
 0x5c4   :  { %v504_v35 = vpop.f32.mrb[2].mxu0 }
 0x5c5   :  { %v418_v36 = vmax.f32 %v415_v33, 0.0  ;;  %v505_v37 = vadd.f32 %v504_v35, %v343_v31  ;;  %v920_v38 = vpop.f32.mrb[3].mxu0 }
 0x5c7   :  { %v508_v39 = vmax.f32 %v505_v37, 0.0  ;;  %760 = vrot.lane.b32.xlu1 %v418_v36, %s1014_s29 }
 0x5c9   :  { %519 = vrot.lane.b32.xlu0 %v508_v39, %s1012_s27  ;;  %v957_v40 = vpack.c.bf16 %v418_v36, %v508_v39 }
 0x5cb   :  { %958 = vmatpush3.bf16.msra.mxu0 %v957_v40 }
 0x5cc   :  { %962 = vmatprep.subr.bf16.mxu0 %v1016_v2 }
 0x5cd   :  { %515 = vrot.lane.b32.xlu0 %v508_v39, %s1013_s28 }
 0x5ce   :  { %933 = vmatmul.mubr.msk.f32.vlgmr.msra.gmra.mrb[4].mxu0 %vm182_vm8, %v510_v41 }
 0x5cf   :  { %946 = vmatprep.mubr.msk.f32.mxu0 %vm1017_vm2, %v1018_v3 }
 0x5d1   :  { %756 = vrot.lane.b32.xlu0 %v418_v36, %s1015_s0 }
 0x5d5   :  { %530 = vperm.xlu0 %983, %v513_v42  }
 0x639   :  { %v761_v45 = vpop.permute.xlu1 %760 }
 0x63a   :  { %v763_v46 = vsel %vm85_vm1, %v761_v45, 0.0 }
 0x63b   :  { %v520_v43 = vpop.permute.xlu0 %519 }
 0x63c   :  { %v522_v44 = vsel %vm70_vm0, 0.0, %v520_v43 }
 0x63d   :  { %524 = vrot.lane.b32.xlu1 %v522_v44, %s1020_s30 }
 0x63f   :  { %v516_v49 = vpop.permute.xlu0 %515 }
 0x640   :  { %v518_v50 = vsel %vm70_vm0, 0.0, %v516_v49 }
 0x641   :  { %765 = vrot.lane.b32.xlu1 %v763_v46, %s1020_s30 }
 0x643   :  { %v757_v52 = vpop.permute.xlu0 %756 }
 0x644   :  { %v759_v55 = vsel %vm85_vm1, %v757_v52, 0.0 }
 0x6a1   :  { %v676_v47 = vpop.f32.mrb[4].mxu0 }
 0x6a2   :  { %v934_v48 = vpop.f32.mrb[5].mxu0 }
 0x6af   :  { %v525_v51 = vpop.permute.xlu1 %524 }
 0x6b0   :  { %v527_v53 = vsel %vm80_vm3, %v518_v50, %v525_v51 }
 0x6b1   :  { %v954_v54 = vpack.c.bf16 %v527_v53, %v418_v36 }
 0x6b3   :  { %v766_v56 = vpop.permute.xlu1 %765  ;;  %955 = vmatpush3.bf16.msra.mxu1 %v954_v54 }
 0x6b4   :  { %v768_v58 = vsel %vm80_vm3, %v759_v55, %v766_v56  ;;  %959 = vmatprep.subr.bf16.mxu1 %v1016_v2  ;;  %v531_v2 = vpop.permute.xlu0 %530 }
 0x6b5   :  { %v963_v59 = vpack.c.bf16 %v508_v39, %v768_v58  ;;  %v677_v62 = vadd.f32 %v676_v47, %v531_v2 }
 0x6b6   :  { %926 = vmatmul.mubr.msk.f32.vlgmr.msra.gmra.mrb[4].mxu1 %vm182_vm8, %v509_v57 }
 0x6b7   :  { %961 = vmatpush3.bf16.msra.mxu1 %v957_v40  ;;  %964 = vmatpush3.bf16.msra.mxu0 %v963_v59  ;;  %v680_v63 = vmax.f32 %v677_v62, 0.0 }
 0x6b8   :  { %939 = vmatprep.mubr.msk.f32.mxu1 %vm1017_vm2, %v1018_v3 }
 0x6b9   :  { %v844_v6 = vrot.slane %v680_v63, 4 }
 0x6ba   :  { %940 = vmatmul.mubr.msk.f32.vlgmr.msra.gmra.mrb[6].mxu1 %vm182_vm8, %v511_v60  ;;  %947 = vmatmul.mubr.msk.f32.vlgmr.msra.gmra.mrb[6].mxu0 %vm182_vm8, %v512_v61 }
 0x789   :  { %v602_v1 = vpop.f32.mrb[4].mxu1 }
 0x78a   :  { %v603_v4 = vadd.f32 %v602_v1, %v531_v2  ;;  %v927_v5 = vpop.f32.mrb[5].mxu1 }
 0x78c   :  { %v606_v7 = vmax.f32 %v603_v4, 0.0 }
 0x78d   :  { %v750_v8 = vpop.f32.mrb[6].mxu1  ;;  %v838_v9 = vpop.f32.mrb[6].mxu0 }
 0x78e   :  { %v849_v10 = vsel %vm98_vm4, %v606_v7, %v844_v6  ;;  %v751_v11 = vadd.f32 %v750_v8, %v531_v2  ;;  %v839_v12 = vadd.f32 %v838_v9, %v531_v2  ;;  %v948_v13 = vpop.f32.mrb[7].mxu0  ;;  %v941_v3 = vpop.f32.mrb[7].mxu1 }
 0x78f   :  { %851 = vst.msk [vmem:[#allocation2] sm:$0xff] %vm182_vm8, %v849_v10 }
 0x790   :  { %v842_v14 = vmax.f32 %v839_v12, 0.0  ;;  %v754_v15 = vmax.f32 %v751_v11, 0.0 }
 0x792   :  { %v847_v16 = vrot.slane %v842_v14, 4 }
 0x794   :  { %v850_v0 = vsel %vm98_vm4, %v754_v15, %v847_v16 }
 0x795   :  { %852 = vst.msk [vmem:[#allocation2 + $0x8] sm:$0xff] %vm182_vm8, %v850_v0 }
 0x796   :  { %999 = shalt.err (!%p996_p4)
}
 0x797   :  { %s1000_s25 = scalar_lea.hbm %s1279_s17, 256 }
 0x798   :  { %p1001_p5 = scmp.ne.s32.totalorder %s1279_s17, %s1000_s25  ;;  %p1004_p6 = scmp.lt.u32.totalorder %s1000_s25, %s1279_s17 }
 0x79a   :  { %p1006_p7 = pnand %p1004_p6, %p1001_p5 }
 0x79c   :  { %1009 = shalt.err (!%p1006_p7)
}
 0x79d   :  { %s1023_s5 = smov 128  }
 0x79e   :  { %864 = dma.vmem_to_hbm [thread:$0]  %s859_s14, 256, %s1279_s17, [#allocation3], %s1023_s5, %s1023_s5, %s1020_s30  }
 0x79f   :  { %1010 = dma.done.wait [#allocation3], 256  }
 0x7a0   :  { %1011 = vsyncadd [#allocation3], 4294967040 }
 0x7a1   :  { %868 = vsyncpa [#allocation3], 1 }

</bundles_post_ra>
